<compile_context>
chip_gen: v5e
topology: v5e:2x2
jax: 0.10.0
libtpu: 0.0.40
codegen_flags: <defaults>
</compile_context>

<pallas_src>
import functools

import jax
import jax.numpy as jnp
from jax.experimental import pallas as pl
from jax.experimental.pallas import tpu as pltpu


def _round_up(x, m):
    return ((x + m - 1) // m) * m


def _default_energy_dtype():
    """bf16 tanh path on chips with a bf16 EUP (v6e / v7x); f32 elsewhere."""
    try:
        kind = jax.devices()[0].device_kind.lower()
    except Exception:
        return jnp.float32
    if ("v6" in kind) or ("v7" in kind) or ("tpu7" in kind):
        return jnp.bfloat16
    return jnp.float32


# ---------------------------------------------------------------------------
# Stage 1: row-tiled Linear (x @ Wt + b) on the MXU.  Only used for the U
# projection of ctx; the W projection of hidden is fused into stage 2.
# ---------------------------------------------------------------------------
def _linear_kernel(x_ref, wt_ref, b_ref, o_ref):
    o_ref[...] = (jnp.dot(x_ref[...], wt_ref[...],
                          preferred_element_type=jnp.float32)
                  + b_ref[...]).astype(o_ref.dtype)


def _linear(x2d, wt, b, out_dtype, *, row_tile=512,
            vmem_limit_bytes=48 * 1024 * 1024):
    R, Din = x2d.shape
    Dout = wt.shape[1]
    tR = R if R <= row_tile else row_tile          # multiple of 8 by construction
    Rp = _round_up(R, tR)
    if Rp != R:
        x2d = jnp.pad(x2d, ((0, Rp - R), (0, 0)))
    y = pl.pallas_call(
        _linear_kernel,
        out_shape=jax.ShapeDtypeStruct((Rp, Dout), out_dtype),
        grid_spec=pltpu.PrefetchScalarGridSpec(
            num_scalar_prefetch=0,
            grid=(Rp // tR,),
            in_specs=[pl.BlockSpec((tR, Din), lambda r: (r, 0)),
                      pl.BlockSpec((Din, Dout), lambda r: (0, 0)),
                      pl.BlockSpec((1, Dout), lambda r: (0, 0))],
            out_specs=pl.BlockSpec((tR, Dout), lambda r: (r, 0))),
        compiler_params=pltpu.CompilerParams(
            dimension_semantics=("parallel",),
            vmem_limit_bytes=vmem_limit_bytes),
    )(x2d, wt, b)
    return y[:R] if Rp != R else y


# ---------------------------------------------------------------------------
# Stage 2: fused W.h projection + additive-attention energies + softmax.
# ---------------------------------------------------------------------------
def _energy_softmax_kernel(h_ref, wt_ref, uc_ref, v_ref, out_ref, *,
                           cl, clp, dp, energy_dtype):
    # h_ref: (1, tHL, Dp)  wt_ref: (Dp, Dp)  uc_ref: (1, CLp, Dp)
    # v_ref: (1, Dp)       out_ref: (1, tHL, CLp)
    f32 = jnp.float32

    # Fused W.h projection: rides in the otherwise-idle MXU slot (this kernel
    # is EUP/tanh bound) and removes the wq HBM round-trip of a 2-pass plan.
    wq = jnp.dot(h_ref[0], wt_ref[...], preferred_element_type=f32)  # (tHL, Dp)
    uc = uc_ref[0]                                                   # (CLp, Dp)
    v = v_ref[...]                                                   # (1, Dp)

    bf16_path = jnp.dtype(energy_dtype) != jnp.dtype(f32)
    thl = wq.shape[0]
    s = jnp.zeros((thl, clp), f32)

    # Chunked D reduction: 3-D temporaries bounded at (tHL, CLp, 128)
    # regardless of D; padded D columns contribute nothing (V is zero-padded).
    for c in range(dp // 128):
        lo = c * 128
        wq_c = wq[:, lo:lo + 128]                       # (tHL, 128) f32
        uc_c = uc[:, lo:lo + 128].astype(f32)           # (CLp, 128) f32
        v_c = v[:, lo:lo + 128]                         # (1, 128)   f32
        e = wq_c[:, None, :] + uc_c[None, :, :]         # (tHL, CLp, 128) f32
        if bf16_path:
            t = jnp.tanh(e.astype(energy_dtype))        # 2x EUP throughput
            s = s + jnp.sum(
                (t * v_c.astype(energy_dtype)[None]).astype(f32), axis=-1)
        else:
            t = jnp.tanh(e)                             # EUP f32
            s = s + jnp.sum(t * v_c[None], axis=-1)     # (tHL, CLp)

    # Mask zero-padded ctx columns (in f32) so the softmax denominator covers
    # only the real ctx_len positions.
    if clp != cl:
        col = jax.lax.broadcasted_iota(jnp.int32, s.shape, 1)
        s = jnp.where(col < cl, s, -1e30)

    m = jnp.max(s, axis=-1, keepdims=True)
    ex = jnp.exp(s - m)
    denom = jnp.sum(ex, axis=-1, keepdims=True)
    out_ref[0] = (ex * pl.reciprocal(denom, approx=True)).astype(out_ref.dtype)


def attention_decoder(hidden, ctx, W_w, U_w, U_b, V_w, *,
                      storage_dtype=jnp.bfloat16,
                      energy_dtype=None,
                      energy_budget_bytes=4 * 1024 * 1024,
                      vmem_limit_bytes=48 * 1024 * 1024):
    """hidden: (B, HL, D), ctx: (B, CL, D); PyTorch nn.Linear weights:
    W_w: (D, D), U_w: (D, D), U_b: (D,), V_w: (1, D).  Returns (B, HL, CL).

    storage_dtype: HBM/DMA dtype for hidden/ctx/weights/uc (bf16 default).
    energy_dtype:  tanh dtype; None -> bf16 on v6e/v7x, f32 otherwise.
    Defaults (4 MiB energy budget, 48 MiB vmem limit) fit v7x's 64 MiB VMEM;
    on v5e/v6e (128 MiB) both can be raised for larger tiles."""
    B, HL, D = hidden.shape
    Bc, CL, Dc = ctx.shape
    assert B == Bc and D == Dc

    f32 = jnp.float32
    if energy_dtype is None:
        energy_dtype = _default_energy_dtype()
    sdt = jnp.dtype(storage_dtype)

    # Lane-align D and CL (pad to multiples of 128).
    Dp = _round_up(D, 128)
    CLp = _round_up(CL, 128)

    # HL tile sized against the per-chunk elementwise temporaries
    # (e f32 + tanh(e) + t*v in energy_dtype), decoupled from D by chunking.
    esize = jnp.dtype(energy_dtype).itemsize
    bytes_per_row = CLp * 128 * (4 + 2 * esize)
    tHL = max(8, min(1024, (energy_budget_bytes // bytes_per_row) // 8 * 8))
    if _round_up(HL, 8) <= tHL:
        tHL = _round_up(HL, 8)
    # v7x has 2 TensorCores: ensure >= 2 parallel grid points when possible.
    while tHL > 8 and B * (_round_up(HL, tHL) // tHL) < 2:
        tHL = _round_up(max(8, tHL // 2), 8)
    HLp = _round_up(HL, tHL)

    # Zero-pad inputs / weights: padded D columns are killed by the zero-padded
    # V row, padded CL rows are masked in-kernel, padded HL rows sliced off.
    hidden_p = jnp.zeros((B, HLp, Dp), sdt).at[:, :HL, :D].set(
        jnp.asarray(hidden, sdt))
    ctx_p = jnp.zeros((B, CLp, Dp), sdt).at[:, :CL, :D].set(
        jnp.asarray(ctx, sdt))
    wt = jnp.zeros((Dp, Dp), sdt).at[:D, :D].set(jnp.asarray(W_w, sdt).T)
    ut = jnp.zeros((Dp, Dp), sdt).at[:D, :D].set(jnp.asarray(U_w, sdt).T)
    ub = jnp.zeros((1, Dp), f32).at[0, :D].set(jnp.asarray(U_b, f32))
    vw = jnp.zeros((1, Dp), f32).at[0, :D].set(
        jnp.asarray(V_w, f32).reshape(-1))

    # Stage 1: uc = ctx @ U^T + b (all batches folded into the row axis);
    # stored in storage_dtype (bf16 default) to halve stage-2 input traffic.
    uc = _linear(ctx_p.reshape(B * CLp, Dp), ut, ub, sdt,
                 vmem_limit_bytes=vmem_limit_bytes).reshape(B, CLp, Dp)

    # Stage 2: fused W.h + energies + softmax.  Grid ordered (B, HL tiles) with
    # HL innermost so the per-batch uc block stays VMEM-resident across tiles;
    # both axes independent -> "parallel" (megacore / v7x 2-TC sharding).
    kernel = functools.partial(_energy_softmax_kernel, cl=CL, clp=CLp, dp=Dp,
                               energy_dtype=energy_dtype)
    attn_p = pl.pallas_call(
        kernel,
        out_shape=jax.ShapeDtypeStruct((B, HLp, CLp), f32),
        grid_spec=pltpu.PrefetchScalarGridSpec(
            num_scalar_prefetch=0,
            grid=(B, HLp // tHL),
            in_specs=[
                pl.BlockSpec((1, tHL, Dp), lambda b, t: (b, t, 0)),
                pl.BlockSpec((Dp, Dp), lambda b, t: (0, 0)),
                pl.BlockSpec((1, CLp, Dp), lambda b, t: (b, 0, 0)),
                pl.BlockSpec((1, Dp), lambda b, t: (0, 0)),
            ],
            out_specs=pl.BlockSpec((1, tHL, CLp), lambda b, t: (b, t, 0))),
        compiler_params=pltpu.CompilerParams(
            dimension_semantics=("parallel", "parallel"),
            vmem_limit_bytes=vmem_limit_bytes),
    )(hidden_p, wt, uc, vw)

    return attn_p[:, :HL, :CL]


if __name__ == "__main__":
    B, HL, CL, D = 2, 8, 8, 32  # batch, hidden_len, ctx_len, hidden_size

    key = jax.random.PRNGKey(0)
    kh, kc, kw, ku, kb, kv = jax.random.split(key, 6)

    hidden = jax.random.normal(kh, (B, HL, D), jnp.float32)
    ctx = jax.random.normal(kc, (B, CL, D), jnp.float32)

    # deterministic "nn.Linear"-style parameter init (uniform +/- 1/sqrt(fan_in))
    bound = 1.0 / (D ** 0.5)
    W_w = jax.random.uniform(kw, (D, D), jnp.float32, -bound, bound)
    U_w = jax.random.uniform(ku, (D, D), jnp.float32, -bound, bound)
    U_b = jax.random.uniform(kb, (D,), jnp.float32, -bound, bound)
    V_w = jax.random.uniform(kv, (1, D), jnp.float32, -bound, bound)

    # pure-JAX reference (intended semantics of the PyTorch module)
    wq_ref = hidden @ W_w.T                                    # (B, HL, D)
    uc_ref = ctx @ U_w.T + U_b                                 # (B, CL, D)
    t_ref = jnp.tanh(wq_ref[:, :, None, :] + uc_ref[:, None, :, :])
    s_ref = jnp.einsum("bijd,d->bij", t_ref, V_w[0])           # (B, HL, CL)
    ref = jax.nn.softmax(s_ref, axis=-1)

    # Full-precision path (f32 storage + f32 tanh): tight tolerance (covers the
    # approximate EUP reciprocal in the softmax).
    attn_f32 = attention_decoder(hidden, ctx, W_w, U_w, U_b, V_w,
                                 storage_dtype=jnp.float32,
                                 energy_dtype=jnp.float32)
    attn_f32 = jax.block_until_ready(attn_f32)
    assert attn_f32.shape == (B, HL, CL)
    assert jnp.allclose(attn_f32, ref, atol=2e-3, rtol=2e-3), "f32 path mismatch"

    # Default fast path (bf16 storage; bf16 tanh on v6e/v7x): looser tolerance.
    attn = attention_decoder(hidden, ctx, W_w, U_w, U_b, V_w)
    attn = jax.block_until_ready(attn)
    assert attn.shape == (B, HL, CL)
    assert jnp.allclose(attn, ref, atol=3e-2, rtol=3e-2), "fast path mismatch"

    print("KERNEL_OK")
</pallas_src>

<mosaic_0001>
module attributes {stable_mosaic.version = 11 : i64} {
  func.func @_linear_kernel(%arg0: i32, %arg1: memref<256x128xf32, #tpu.memory_space<vmem>>, %arg2: memref<128x128xf32, #tpu.memory_space<vmem>>, %arg3: memref<1x128xf32, #tpu.memory_space<vmem>>, %arg4: memref<256x128xf32, #tpu.memory_space<vmem>>) attributes {dimension_semantics = [#tpu.dimension_semantics<parallel>], iteration_bounds = array<i64: 1>, scalar_prefetch = 0 : i64, scratch_operands = 0 : i64, tpu.core_type = #tpu.core_type<tc>, window_params = [{transform_indices = @transform_0, window_bounds = array<i64: 256, 128>}, {pipeline_mode = #tpu.pipeline_mode<synchronous>, transform_indices = @transform_1, window_bounds = array<i64: 128, 128>}, {pipeline_mode = #tpu.pipeline_mode<synchronous>, transform_indices = @transform_2, window_bounds = array<i64: 1, 128>}, {transform_indices = @transform_3, window_bounds = array<i64: 256, 128>}]} {
    %c0 = arith.constant 0 : index
    %c0_0 = arith.constant 0 : index
    %0 = vector.load %arg1[%c0, %c0_0] : memref<256x128xf32, #tpu.memory_space<vmem>>, vector<256x128xf32>
    %c0_1 = arith.constant 0 : index
    %c0_2 = arith.constant 0 : index
    %1 = vector.load %arg2[%c0_1, %c0_2] : memref<128x128xf32, #tpu.memory_space<vmem>>, vector<128x128xf32>
    %cst = arith.constant dense<0.000000e+00> : vector<256x128xf32>
    %2 = tpu.matmul %0, %1, %cst {dimension_numbers = #tpu.dot_dimension_numbers<[1], [0], [0], [1], [0, 0, 1, 1], [], []>} : vector<256x128xf32>, vector<128x128xf32>, vector<256x128xf32> -> vector<256x128xf32>
    %c0_3 = arith.constant 0 : index
    %c0_4 = arith.constant 0 : index
    %3 = vector.load %arg3[%c0_3, %c0_4] : memref<1x128xf32, #tpu.memory_space<vmem>>, vector<1x128xf32>
    %4 = vector.broadcast %3 : vector<1x128xf32> to vector<256x128xf32>
    %5 = arith.addf %2, %4 : vector<256x128xf32>
    %c0_5 = arith.constant 0 : index
    %c0_6 = arith.constant 0 : index
    %6 = vector.load %arg4[%c0_5, %c0_6] : memref<256x128xf32, #tpu.memory_space<vmem>>, vector<256x128xf32>
    tpu.vector_store %arg4[%c0_5, %c0_6], %5 {strides = array<i32>} : memref<256x128xf32, #tpu.memory_space<vmem>>, vector<256x128xf32>,
    return
  }
  func.func @transform_0(%arg0: i32) -> (i32, i32) {
    %c0_i32 = arith.constant 0 : i32
    %c0_i32_0 = arith.constant 0 : i32
    return %arg0, %c0_i32 : i32, i32
  }
  func.func @transform_1(%arg0: i32) -> (i32, i32) {
    %c0_i32 = arith.constant 0 : i32
    %c0_i32_0 = arith.constant 0 : i32
    %c0_i32_1 = arith.constant 0 : i32
    return %c0_i32, %c0_i32_0 : i32, i32
  }
  func.func @transform_2(%arg0: i32) -> (i32, i32) {
    %c0_i32 = arith.constant 0 : i32
    %c0_i32_0 = arith.constant 0 : i32
    %c0_i32_1 = arith.constant 0 : i32
    return %c0_i32, %c0_i32_0 : i32, i32
  }
  func.func @transform_3(%arg0: i32) -> (i32, i32) {
    %c0_i32 = arith.constant 0 : i32
    %c0_i32_0 = arith.constant 0 : i32
    return %arg0, %c0_i32 : i32, i32
  }
}

</mosaic_0001>

<bundles_post_ra>
// kernel: tpu_custom_call.1
= control target key start
LH: loop header
LB: loop body
LE: loop exit
PB: predicated region body
PF: predicated region fallthrough
CT: control target
= control target key end

     0   :  { %8 = vsyncpa [#allocation3], 0  ;;  %s476_s0 = inlined_call_operand.hbm [shape: f32[256,128], index: 0, kind: input, shape index: {}]   ;;  %s477_s1 = inlined_call_operand.hbm [shape: f32[128,128], index: 1, kind: input, shape index: {}]   ;;  %s478_s2 = inlined_call_operand.vmem [shape: f32[1,128], index: 2, kind: input, shape index: {}]   ;;  %s479_s3 = inlined_call_operand.hbm [shape: f32[256,128], index: 3, kind: output, shape index: {}]  }
   0x1   :  { %9 = vsyncpa [#allocation6], 0 }
   0x2   :  { %10 = vsyncpa [#allocation4], 0  ;;  %s15_s14 = sshll.u32 %s476_s0, 4  ;;  %s396_s15 = smov [#allocation2]   ;;  %s16_s14 = int_to_ptr.hbm [resolvable:$true] %s15_s14 }
   0x3   :  { %s17_s16 = sshll.u32 %s396_s15, 4  ;;  %s28_s19 = sshll.u32 %s477_s1, 4  ;;  %s18_s16 = int_to_ptr.vmem [resolvable:$true] %s17_s16  ;;  %s29_s19 = int_to_ptr.hbm [resolvable:$true] %s28_s19 }
   0x4   :  { %s397_s20 = smov 128   ;;  %s398_s21 = smov 8  }
   0x5   :  { %23 = dma.hbm_to_vmem [thread:$0]  %s16_s14, 4096, %s18_s16, [#allocation3], %s397_s20, %s397_s20, %s398_s21  }
   0x6   :  { %s399_s22 = smov [#allocation5]  }
   0x7   :  { %s30_s23 = sshll.u32 %s399_s22, 4  ;;  %s31_s23 = int_to_ptr.vmem [resolvable:$true] %s30_s23 }
   0x8   :  { %36 = dma.hbm_to_vmem [thread:$0]  %s29_s19, 2048, %s31_s23, [#allocation6], %s397_s20, %s397_s20, %s398_s21  }
   0x9   :  { %390 = dma.done.wait [#allocation3], 4096  }
   0xa   :  { %391 = vsyncadd [#allocation3], 4294963200 }
   0xb   :  { %392 = dma.done.wait [#allocation6], 2048  }
   0xc   :  { %393 = vsyncadd [#allocation6], 4294965248  ;;  %v94_v0 = vld [vmem:[#allocation5 + $0x78] sm:$0xff]  ;;  %v93_v1 = vld [vmem:[#allocation5 + $0x70] sm:$0xff]  ;;  %s250_s27 = sshll.u32 %s479_s3, 4  ;;  %s251_s27 = int_to_ptr.hbm [resolvable:$true] %s250_s27 }
   0xd   :  { %265 = vmatpush.msra.mxu2 %v94_v0  ;;  %266 = vmatpush.msra.mxu3 %v94_v0  ;;  %v92_v2 = vld [vmem:[#allocation5 + $0x68] sm:$0xff]  ;;  %v91_v3 = vld [vmem:[#allocation5 + $0x60] sm:$0xff]  ;;  %v90_v4 = vld [vmem:[#allocation5 + $0x58] sm:$0xff] }
   0xe   :  { %99 = vmatpush.msra.mxu0 %v94_v0  ;;  %264 = vmatpush.msra.mxu1 %v94_v0  ;;  %v89_v5 = vld [vmem:[#allocation5 + $0x50] sm:$0xff]  ;;  %v88_v6 = vld [vmem:[#allocation5 + $0x48] sm:$0xff]  ;;  %v87_v7 = vld [vmem:[#allocation5 + $0x40] sm:$0xff] }
   0xf   :  { %268 = vmatpush.msra.mxu2 %v93_v1  ;;  %269 = vmatpush.msra.mxu3 %v93_v1  ;;  %v86_v8 = vld [vmem:[#allocation5 + $0x38] sm:$0xff]  ;;  %v85_v9 = vld [vmem:[#allocation5 + $0x30] sm:$0xff]  ;;  %v84_v10 = vld [vmem:[#allocation5 + $0x28] sm:$0xff] }
  0x10   :  { %100 = vmatpush.msra.mxu0 %v93_v1  ;;  %267 = vmatpush.msra.mxu1 %v93_v1  ;;  %v83_v11 = vld [vmem:[#allocation5 + $0x20] sm:$0xff]  ;;  %v82_v12 = vld [vmem:[#allocation5 + $0x18] sm:$0xff]  ;;  %v81_v13 = vld [vmem:[#allocation5 + $0x10] sm:$0xff] }
  0x11   :  { %271 = vmatpush.msra.mxu2 %v92_v2  ;;  %272 = vmatpush.msra.mxu3 %v92_v2  ;;  %v80_v14 = vld [vmem:[#allocation5 + $0x8] sm:$0xff]  ;;  %v79_v15 = vld [vmem:[#allocation5] sm:$0xff]  ;;  %v65_v24 = vld [vmem:[#allocation2 + $0x90] sm:$0xff] }
  0x12   :  { %101 = vmatpush.msra.mxu0 %v92_v2  ;;  %270 = vmatpush.msra.mxu1 %v92_v2  ;;  %v63_v16 = vld [vmem:[#allocation2 + $0x80] sm:$0xff]  ;;  %v64_v20 = vld [vmem:[#allocation2 + $0x88] sm:$0xff]  ;;  %v73_v25 = vld [vmem:[#allocation2 + $0xd0] sm:$0xff] }
  0x13   :  { %274 = vmatpush.msra.mxu2 %v91_v3  ;;  %275 = vmatpush.msra.mxu3 %v91_v3  ;;  %v71_v17 = vld [vmem:[#allocation2 + $0xc0] sm:$0xff]  ;;  %v72_v21 = vld [vmem:[#allocation2 + $0xc8] sm:$0xff]  ;;  %v49_v26 = vld [vmem:[#allocation2 + $0x10] sm:$0xff] }
  0x14   :  { %102 = vmatpush.msra.mxu0 %v91_v3  ;;  %273 = vmatpush.msra.mxu1 %v91_v3  ;;  %v47_v18 = vld [vmem:[#allocation2] sm:$0xff]  ;;  %v48_v22 = vld [vmem:[#allocation2 + $0x8] sm:$0xff]  ;;  %v57_v27 = vld [vmem:[#allocation2 + $0x50] sm:$0xff] }
  0x15   :  { %277 = vmatpush.msra.mxu2 %v90_v4  ;;  %278 = vmatpush.msra.mxu3 %v90_v4  ;;  %v55_v19 = vld [vmem:[#allocation2 + $0x40] sm:$0xff]  ;;  %v56_v23 = vld [vmem:[#allocation2 + $0x48] sm:$0xff]  ;;  %v66_v28 = vld [vmem:[#allocation2 + $0x98] sm:$0xff] }
  0x16   :  { %103 = vmatpush.msra.mxu0 %v90_v4  ;;  %276 = vmatpush.msra.mxu1 %v90_v4  ;;  %v74_v29 = vld [vmem:[#allocation2 + $0xd8] sm:$0xff]  ;;  %v67_v32 = vld [vmem:[#allocation2 + $0xa0] sm:$0xff]  ;;  %v68_v36 = vld [vmem:[#allocation2 + $0xa8] sm:$0xff] }
  0x17   :  { %280 = vmatpush.msra.mxu2 %v89_v5  ;;  %281 = vmatpush.msra.mxu3 %v89_v5  ;;  %v50_v30 = vld [vmem:[#allocation2 + $0x18] sm:$0xff]  ;;  %v75_v33 = vld [vmem:[#allocation2 + $0xe0] sm:$0xff]  ;;  %v76_v37 = vld [vmem:[#allocation2 + $0xe8] sm:$0xff] }
  0x18   :  { %104 = vmatpush.msra.mxu0 %v89_v5  ;;  %279 = vmatpush.msra.mxu1 %v89_v5  ;;  %v58_v31 = vld [vmem:[#allocation2 + $0x58] sm:$0xff]  ;;  %v51_v34 = vld [vmem:[#allocation2 + $0x20] sm:$0xff]  ;;  %v52_v38 = vld [vmem:[#allocation2 + $0x28] sm:$0xff] }
  0x19   :  { %283 = vmatpush.msra.mxu2 %v88_v6  ;;  %284 = vmatpush.msra.mxu3 %v88_v6  ;;  %v59_v35 = vld [vmem:[#allocation2 + $0x60] sm:$0xff]  ;;  %v60_v39 = vld [vmem:[#allocation2 + $0x68] sm:$0xff]  ;;  %v69_v40 = vld [vmem:[#allocation2 + $0xb0] sm:$0xff] }
  0x1a   :  { %105 = vmatpush.msra.mxu0 %v88_v6  ;;  %282 = vmatpush.msra.mxu1 %v88_v6  ;;  %v77_v41 = vld [vmem:[#allocation2 + $0xf0] sm:$0xff]  ;;  %v70_v44 = vld [vmem:[#allocation2 + $0xb8] sm:$0xff]  ;;  %v436_v48 = vld [vmem:[%s478_s2] ss:$0 sm:$0xff]  ;;  %s400_s2 = smov [#allocation7]  }
  0x1b   :  { %286 = vmatpush.msra.mxu2 %v87_v7  ;;  %287 = vmatpush.msra.mxu3 %v87_v7  ;;  %v53_v42 = vld [vmem:[#allocation2 + $0x30] sm:$0xff]  ;;  %v78_v45 = vld [vmem:[#allocation2 + $0xf8] sm:$0xff]  ;;  %s248_s24 = sshll.u32 %s400_s2, 4  ;;  %s249_s24 = int_to_ptr.vmem [resolvable:$true] %s248_s24 }
  0x1c   :  { %106 = vmatpush.msra.mxu0 %v87_v7  ;;  %285 = vmatpush.msra.mxu1 %v87_v7  ;;  %v61_v43 = vld [vmem:[#allocation2 + $0x70] sm:$0xff]  ;;  %v54_v46 = vld [vmem:[#allocation2 + $0x38] sm:$0xff] }
  0x1d   :  { %289 = vmatpush.msra.mxu2 %v86_v8  ;;  %290 = vmatpush.msra.mxu3 %v86_v8  ;;  %v62_v47 = vld [vmem:[#allocation2 + $0x78] sm:$0xff] }
  0x1e   :  { %107 = vmatpush.msra.mxu0 %v86_v8  ;;  %288 = vmatpush.msra.mxu1 %v86_v8 }
  0x1f   :  { %292 = vmatpush.msra.mxu2 %v85_v9  ;;  %293 = vmatpush.msra.mxu3 %v85_v9 }
  0x20   :  { %108 = vmatpush.msra.mxu0 %v85_v9  ;;  %291 = vmatpush.msra.mxu1 %v85_v9 }
  0x21   :  { %295 = vmatpush.msra.mxu2 %v84_v10  ;;  %296 = vmatpush.msra.mxu3 %v84_v10 }
  0x22   :  { %109 = vmatpush.msra.mxu0 %v84_v10  ;;  %294 = vmatpush.msra.mxu1 %v84_v10 }
  0x23   :  { %298 = vmatpush.msra.mxu2 %v83_v11  ;;  %299 = vmatpush.msra.mxu3 %v83_v11 }
  0x24   :  { %110 = vmatpush.msra.mxu0 %v83_v11  ;;  %297 = vmatpush.msra.mxu1 %v83_v11 }
  0x25   :  { %301 = vmatpush.msra.mxu2 %v82_v12  ;;  %302 = vmatpush.msra.mxu3 %v82_v12 }
  0x26   :  { %111 = vmatpush.msra.mxu0 %v82_v12  ;;  %300 = vmatpush.msra.mxu1 %v82_v12 }
  0x27   :  { %304 = vmatpush.msra.mxu2 %v81_v13  ;;  %305 = vmatpush.msra.mxu3 %v81_v13 }
  0x28   :  { %112 = vmatpush.msra.mxu0 %v81_v13  ;;  %303 = vmatpush.msra.mxu1 %v81_v13 }
  0x29   :  { %307 = vmatpush.msra.mxu2 %v80_v14  ;;  %308 = vmatpush.msra.mxu3 %v80_v14 }
  0x2a   :  { %113 = vmatpush.msra.mxu0 %v80_v14  ;;  %306 = vmatpush.msra.mxu1 %v80_v14 }
  0x2b   :  { %310 = vmatpush.msra.mxu2 %v79_v15  ;;  %311 = vmatpush.msra.mxu3 %v79_v15 }
  0x2c   :  { %163 = vmatmul.f32.vlgmr.msra.gmra.mxu2 %v63_v16  ;;  %187 = vmatmul.f32.vlgmr.msra.gmra.mxu3 %v71_v17 }
  0x2d   :  { %114 = vmatpush.msra.mxu0 %v79_v15  ;;  %309 = vmatpush.msra.mxu1 %v79_v15 }
  0x2e   :  { %115 = vmatmul.f32.vlgmr.msra.gmra.mxu0 %v47_v18  ;;  %139 = vmatmul.f32.vlgmr.msra.gmra.mxu1 %v55_v19 }
  0x34   :  { %166 = vmatmul.f32.gmra.mxu2 %v64_v20  ;;  %190 = vmatmul.f32.gmra.mxu3 %v72_v21 }
  0x36   :  { %118 = vmatmul.f32.gmra.mxu0 %v48_v22  ;;  %142 = vmatmul.f32.gmra.mxu1 %v56_v23 }
  0x3c   :  { %169 = vmatmul.f32.gmra.mxu2 %v65_v24  ;;  %193 = vmatmul.f32.gmra.mxu3 %v73_v25 }
  0x3e   :  { %121 = vmatmul.f32.gmra.mxu0 %v49_v26  ;;  %145 = vmatmul.f32.gmra.mxu1 %v57_v27 }
  0x44   :  { %172 = vmatmul.f32.gmra.mxu2 %v66_v28  ;;  %196 = vmatmul.f32.gmra.mxu3 %v74_v29 }
  0x46   :  { %124 = vmatmul.f32.gmra.mxu0 %v50_v30  ;;  %148 = vmatmul.f32.gmra.mxu1 %v58_v31 }
  0x4c   :  { %175 = vmatmul.f32.gmra.mxu2 %v67_v32  ;;  %199 = vmatmul.f32.gmra.mxu3 %v75_v33 }
  0x4e   :  { %127 = vmatmul.f32.gmra.mxu0 %v51_v34  ;;  %151 = vmatmul.f32.gmra.mxu1 %v59_v35 }
  0x54   :  { %178 = vmatmul.f32.gmra.mxu2 %v68_v36  ;;  %202 = vmatmul.f32.gmra.mxu3 %v76_v37 }
  0x56   :  { %130 = vmatmul.f32.gmra.mxu0 %v52_v38  ;;  %154 = vmatmul.f32.gmra.mxu1 %v60_v39 }
  0x5c   :  { %181 = vmatmul.f32.gmra.mxu2 %v69_v40  ;;  %205 = vmatmul.f32.gmra.mxu3 %v77_v41 }
  0x5e   :  { %133 = vmatmul.f32.gmra.mxu0 %v53_v42  ;;  %157 = vmatmul.f32.gmra.mxu1 %v61_v43 }
  0x64   :  { %184 = vmatmul.f32.gmra.mxu2 %v70_v44  ;;  %208 = vmatmul.f32.gmra.mxu3 %v78_v45 }
  0x66   :  { %136 = vmatmul.f32.gmra.mxu0 %v54_v46  ;;  %160 = vmatmul.f32.gmra.mxu1 %v62_v47 }
  0xab   :  { %v116_v49 = vpop.f32.mrf.mxu0  ;;  %v140_v50 = vpop.f32.mrf.mxu1 }
  0xac   :  { %v117_v51 = vadd.f32 %v436_v48, %v116_v49  ;;  %v141_v52 = vadd.f32 %v436_v48, %v140_v50 }
  0xae   :  { %212 = vst [vmem:[#allocation7] sm:$0xff] %v117_v51 }
  0xaf   :  { %220 = vst [vmem:[#allocation7 + $0x40] sm:$0xff] %v141_v52  ;;  %v164_v53 = vpop.f32.mrf.mxu2  ;;  %v188_v54 = vpop.f32.mrf.mxu3 }
  0xb0   :  { %v165_v55 = vadd.f32 %v436_v48, %v164_v53  ;;  %v189_v56 = vadd.f32 %v436_v48, %v188_v54 }
  0xb2   :  { %228 = vst [vmem:[#allocation7 + $0x80] sm:$0xff] %v165_v55 }
  0xb3   :  { %236 = vst [vmem:[#allocation7 + $0xc0] sm:$0xff] %v189_v56  ;;  %v119_v57 = vpop.f32.mrf.mxu0  ;;  %v143_v58 = vpop.f32.mrf.mxu1 }
  0xb4   :  { %v120_v59 = vadd.f32 %v436_v48, %v119_v57  ;;  %v144_v60 = vadd.f32 %v436_v48, %v143_v58 }
  0xb6   :  { %213 = vst [vmem:[#allocation7 + $0x8] sm:$0xff] %v120_v59 }
  0xb7   :  { %221 = vst [vmem:[#allocation7 + $0x48] sm:$0xff] %v144_v60  ;;  %v167_v61 = vpop.f32.mrf.mxu2  ;;  %v191_v62 = vpop.f32.mrf.mxu3 }
  0xb8   :  { %v168_v63 = vadd.f32 %v436_v48, %v167_v61  ;;  %v192_v0 = vadd.f32 %v436_v48, %v191_v62 }
  0xba   :  { %229 = vst [vmem:[#allocation7 + $0x88] sm:$0xff] %v168_v63 }
  0xbb   :  { %237 = vst [vmem:[#allocation7 + $0xc8] sm:$0xff] %v192_v0  ;;  %v122_v1 = vpop.f32.mrf.mxu0  ;;  %v146_v2 = vpop.f32.mrf.mxu1 }
  0xbc   :  { %v123_v3 = vadd.f32 %v436_v48, %v122_v1  ;;  %v147_v4 = vadd.f32 %v436_v48, %v146_v2 }
  0xbe   :  { %214 = vst [vmem:[#allocation7 + $0x10] sm:$0xff] %v123_v3 }
  0xbf   :  { %222 = vst [vmem:[#allocation7 + $0x50] sm:$0xff] %v147_v4  ;;  %v170_v5 = vpop.f32.mrf.mxu2  ;;  %v194_v6 = vpop.f32.mrf.mxu3 }
  0xc0   :  { %v171_v7 = vadd.f32 %v436_v48, %v170_v5  ;;  %v195_v8 = vadd.f32 %v436_v48, %v194_v6 }
  0xc2   :  { %230 = vst [vmem:[#allocation7 + $0x90] sm:$0xff] %v171_v7 }
  0xc3   :  { %238 = vst [vmem:[#allocation7 + $0xd0] sm:$0xff] %v195_v8  ;;  %v125_v9 = vpop.f32.mrf.mxu0  ;;  %v149_v10 = vpop.f32.mrf.mxu1 }
  0xc4   :  { %v126_v11 = vadd.f32 %v436_v48, %v125_v9  ;;  %v150_v12 = vadd.f32 %v436_v48, %v149_v10 }
  0xc6   :  { %215 = vst [vmem:[#allocation7 + $0x18] sm:$0xff] %v126_v11 }
  0xc7   :  { %223 = vst [vmem:[#allocation7 + $0x58] sm:$0xff] %v150_v12  ;;  %v173_v13 = vpop.f32.mrf.mxu2  ;;  %v197_v14 = vpop.f32.mrf.mxu3 }
  0xc8   :  { %v174_v15 = vadd.f32 %v436_v48, %v173_v13  ;;  %v198_v16 = vadd.f32 %v436_v48, %v197_v14 }
  0xca   :  { %231 = vst [vmem:[#allocation7 + $0x98] sm:$0xff] %v174_v15 }
  0xcb   :  { %239 = vst [vmem:[#allocation7 + $0xd8] sm:$0xff] %v198_v16  ;;  %v128_v17 = vpop.f32.mrf.mxu0  ;;  %v152_v18 = vpop.f32.mrf.mxu1 }
  0xcc   :  { %v129_v19 = vadd.f32 %v436_v48, %v128_v17  ;;  %v153_v20 = vadd.f32 %v436_v48, %v152_v18 }
  0xce   :  { %216 = vst [vmem:[#allocation7 + $0x20] sm:$0xff] %v129_v19 }
  0xcf   :  { %224 = vst [vmem:[#allocation7 + $0x60] sm:$0xff] %v153_v20  ;;  %v176_v21 = vpop.f32.mrf.mxu2  ;;  %v200_v22 = vpop.f32.mrf.mxu3 }
  0xd0   :  { %v177_v23 = vadd.f32 %v436_v48, %v176_v21  ;;  %v201_v24 = vadd.f32 %v436_v48, %v200_v22 }
  0xd2   :  { %232 = vst [vmem:[#allocation7 + $0xa0] sm:$0xff] %v177_v23 }
  0xd3   :  { %240 = vst [vmem:[#allocation7 + $0xe0] sm:$0xff] %v201_v24  ;;  %v131_v25 = vpop.f32.mrf.mxu0  ;;  %v155_v26 = vpop.f32.mrf.mxu1 }
  0xd4   :  { %v132_v27 = vadd.f32 %v436_v48, %v131_v25  ;;  %v156_v28 = vadd.f32 %v436_v48, %v155_v26 }
  0xd6   :  { %217 = vst [vmem:[#allocation7 + $0x28] sm:$0xff] %v132_v27 }
  0xd7   :  { %225 = vst [vmem:[#allocation7 + $0x68] sm:$0xff] %v156_v28  ;;  %v179_v29 = vpop.f32.mrf.mxu2  ;;  %v203_v30 = vpop.f32.mrf.mxu3 }
  0xd8   :  { %v180_v31 = vadd.f32 %v436_v48, %v179_v29  ;;  %v204_v32 = vadd.f32 %v436_v48, %v203_v30 }
  0xda   :  { %233 = vst [vmem:[#allocation7 + $0xa8] sm:$0xff] %v180_v31 }
  0xdb   :  { %241 = vst [vmem:[#allocation7 + $0xe8] sm:$0xff] %v204_v32  ;;  %v134_v33 = vpop.f32.mrf.mxu0  ;;  %v158_v34 = vpop.f32.mrf.mxu1 }
  0xdc   :  { %v135_v35 = vadd.f32 %v436_v48, %v134_v33  ;;  %v159_v36 = vadd.f32 %v436_v48, %v158_v34 }
  0xde   :  { %218 = vst [vmem:[#allocation7 + $0x30] sm:$0xff] %v135_v35 }
  0xdf   :  { %226 = vst [vmem:[#allocation7 + $0x70] sm:$0xff] %v159_v36  ;;  %v182_v37 = vpop.f32.mrf.mxu2  ;;  %v206_v38 = vpop.f32.mrf.mxu3 }
  0xe0   :  { %v183_v39 = vadd.f32 %v436_v48, %v182_v37  ;;  %v207_v40 = vadd.f32 %v436_v48, %v206_v38 }
  0xe2   :  { %234 = vst [vmem:[#allocation7 + $0xb0] sm:$0xff] %v183_v39 }
  0xe3   :  { %242 = vst [vmem:[#allocation7 + $0xf0] sm:$0xff] %v207_v40  ;;  %v137_v41 = vpop.f32.mrf.mxu0  ;;  %v161_v42 = vpop.f32.mrf.mxu1 }
  0xe4   :  { %v138_v43 = vadd.f32 %v436_v48, %v137_v41  ;;  %v162_v44 = vadd.f32 %v436_v48, %v161_v42 }
  0xe6   :  { %219 = vst [vmem:[#allocation7 + $0x38] sm:$0xff] %v138_v43 }
  0xe7   :  { %227 = vst [vmem:[#allocation7 + $0x78] sm:$0xff] %v162_v44  ;;  %v185_v45 = vpop.f32.mrf.mxu2  ;;  %v209_v46 = vpop.f32.mrf.mxu3 }
  0xe8   :  { %v186_v47 = vadd.f32 %v436_v48, %v185_v45  ;;  %v210_v49 = vadd.f32 %v436_v48, %v209_v46 }
  0xea   :  { %235 = vst [vmem:[#allocation7 + $0xb8] sm:$0xff] %v186_v47 }
  0xeb   :  { %243 = vst [vmem:[#allocation7 + $0xf8] sm:$0xff] %v210_v49 }
  0xec   :  { %256 = dma.vmem_to_hbm [thread:$0]  %s249_s24, 4096, %s251_s27, [#allocation4], %s397_s20, %s397_s20, %s398_s21  }
  0xed   :  { %394 = dma.done.wait [#allocation4], 4096  }
  0xee   :  { %395 = vsyncadd [#allocation4], 4294963200 }
  0xef   :  { %261 = vsyncpa [#allocation3], 1 }
  0xf0   :  { %262 = vsyncpa [#allocation6], 1 }
  0xf1   :  { %263 = vsyncpa [#allocation4], 1 }

</bundles_post_ra>
